<compile_context>
chip_gen: v6e
topology: v6e:2x2x1
jax: 0.10.0
libtpu: 0.0.40
codegen_flags: <defaults>
</compile_context>

<pallas_src>
import functools

import jax
import jax.numpy as jnp
from jax.experimental import pallas as pl
from jax.experimental.pallas import tpu as pltpu

LN_EPS = 1e-5      # torch.nn.LayerNorm default
_LANES = 128       # TPU lane width


def _round_up(n, m):
    return ((n + m - 1) // m) * m


@functools.lru_cache(maxsize=None)
def _vmem_budget_bytes():
    """~3/4 of the per-generation VMEM capacity (v5e/v6e 128 MiB, v7x 64 MiB)."""
    try:
        cap = int(pltpu.get_tpu_info().vmem_capacity_bytes)
    except Exception:
        cap = 64 * 2**20            # conservative fallback (v7x per-TensorCore)
    return (cap * 3) // 4


def _ln_relu(h, gamma, beta, inv_n):
    """Two-pass LayerNorm statistics (f32) -> affine -> ReLU.  h: (tm, out_dim) f32."""
    mean = jnp.sum(h, axis=-1, keepdims=True) * inv_n
    d = h - mean
    var = jnp.sum(d * d, axis=-1, keepdims=True) * inv_n
    hn = d * jax.lax.rsqrt(var + LN_EPS)
    hn = hn * gamma.astype(jnp.float32) + beta.astype(jnp.float32)
    return jnp.maximum(hn, 0.0)          # ReLU; Dropout(eval) == identity


# ---------------------------------------------------------------------------
# Kernels: {resident weight, K-tiled weight} x {identity residual, projection residual}
# ---------------------------------------------------------------------------

def _kernel_single_id(x_ref, w_ref, b_ref, g_ref, be_ref, o_ref, *, inv_n):
    x = x_ref[...]
    h = jnp.dot(x, w_ref[...], preferred_element_type=jnp.float32)
    act = _ln_relu(h + b_ref[...].astype(jnp.float32), g_ref[...], be_ref[...], inv_n)
    o_ref[...] = (act + x.astype(jnp.float32)).astype(o_ref.dtype)


def _kernel_single_proj(x_ref, w_ref, wr_ref, b_ref, br_ref, g_ref, be_ref, o_ref, *, inv_n):
    x = x_ref[...]
    h = jnp.dot(x, w_ref[...], preferred_element_type=jnp.float32)
    res = jnp.dot(x, wr_ref[...], preferred_element_type=jnp.float32)
    act = _ln_relu(h + b_ref[...].astype(jnp.float32), g_ref[...], be_ref[...], inv_n)
    o_ref[...] = (act + res + br_ref[...].astype(jnp.float32)).astype(o_ref.dtype)


def _kernel_ktiled_id(xk_ref, xfull_ref, w_ref, b_ref, g_ref, be_ref, o_ref, acc_ref, *, inv_n):
    k = pl.program_id(1)

    @pl.when(k == 0)
    def _():
        acc_ref[...] = jnp.zeros_like(acc_ref)

    acc_ref[...] += jnp.dot(xk_ref[...], w_ref[...], preferred_element_type=jnp.float32)

    @pl.when(k == pl.num_programs(1) - 1)
    def _():
        act = _ln_relu(acc_ref[...] + b_ref[...].astype(jnp.float32),
                       g_ref[...], be_ref[...], inv_n)
        o_ref[...] = (act + xfull_ref[...].astype(jnp.float32)).astype(o_ref.dtype)


def _kernel_ktiled_proj(xk_ref, w_ref, wr_ref, b_ref, br_ref, g_ref, be_ref, o_ref,
                        acc_h, acc_r, *, inv_n):
    k = pl.program_id(1)

    @pl.when(k == 0)
    def _():
        acc_h[...] = jnp.zeros_like(acc_h)
        acc_r[...] = jnp.zeros_like(acc_r)

    xk = xk_ref[...]
    acc_h[...] += jnp.dot(xk, w_ref[...], preferred_element_type=jnp.float32)
    acc_r[...] += jnp.dot(xk, wr_ref[...], preferred_element_type=jnp.float32)

    @pl.when(k == pl.num_programs(1) - 1)
    def _():
        act = _ln_relu(acc_h[...] + b_ref[...].astype(jnp.float32),
                       g_ref[...], be_ref[...], inv_n)
        o_ref[...] = (act + acc_r[...] + br_ref[...].astype(jnp.float32)).astype(o_ref.dtype)


# ---------------------------------------------------------------------------
# Tiling heuristics
# ---------------------------------------------------------------------------

def _pick_tk(in_dim, out_dim, identity, w_item, budget):
    """K tile: full in_dim (resident, single-buffered weight) when it fits ~1/4 of the
    VMEM budget, else the largest 128-multiple divisor whose double-buffered tiles fit."""
    n_w = 1 if identity else 2
    lanes_out = _round_up(out_dim, _LANES)
    if in_dim % _LANES != 0 or n_w * in_dim * lanes_out * w_item <= budget // 4:
        return in_dim
    for cand in range(in_dim - _LANES, _LANES - 1, -_LANES):
        if in_dim % cand == 0 and 2 * n_w * cand * lanes_out * w_item <= budget // 4:
            return cand
    return _LANES


def _est_vmem_bytes(tm, tk, in_dim, out_dim, nk, identity, x_item, w_item):
    """Per-spec buffer counts: x/out x2, resident weight x1 (Buffered(1)), streamed weight x2,
    plus accumulators and Mosaic f32 temporaries."""
    n_w = 1 if identity else 2
    lanes_out = _round_up(out_dim, _LANES)
    lanes_in = _round_up(in_dim, _LANES)
    lanes_tk = _round_up(tk, _LANES)
    est = 0
    if nk == 1:
        est += 2 * tm * lanes_in * x_item                         # x tiles (double-buffered)
        est += n_w * _round_up(in_dim, 8) * lanes_out * w_item    # resident weights (x1)
    else:
        est += 2 * tm * lanes_tk * x_item                         # x K-chunks
        if identity:
            est += 2 * tm * lanes_in * x_item                     # full-row x for the residual
        est += 2 * n_w * _round_up(tk, 8) * lanes_out * w_item    # streamed weight tiles (x2)
        est += n_w * tm * lanes_out * 4                           # f32 accumulators
    est += 8 * lanes_out * w_item * (3 if identity else 5)        # bias / gamma / beta rows
    est += 2 * tm * lanes_out * x_item                            # output tiles
    est += 4 * tm * lanes_out * 4                                 # f32 LN/ReLU temporaries
    return est


# ---------------------------------------------------------------------------
# Wrapper
# ---------------------------------------------------------------------------

def init_encoder_block_params(key, in_dim, out_dim, dtype=jnp.float32):
    """PyTorch-style uniform(-1/sqrt(in_dim), 1/sqrt(in_dim)) init."""
    k1, k2, k3, k4 = jax.random.split(key, 4)
    bound = 1.0 / float(in_dim) ** 0.5
    params = {
        # stored already transposed: (in_dim, out_dim); kernel does x @ W
        "w": jax.random.uniform(k1, (in_dim, out_dim), dtype, -bound, bound),
        "b": jax.random.uniform(k2, (1, out_dim), dtype, -bound, bound),
        "gamma": jnp.ones((1, out_dim), dtype),
        "beta": jnp.zeros((1, out_dim), dtype),
    }
    if in_dim != out_dim:
        params["wr"] = jax.random.uniform(k3, (in_dim, out_dim), dtype, -bound, bound)
        params["br"] = jax.random.uniform(k4, (1, out_dim), dtype, -bound, bound)
    return params


@functools.partial(jax.jit, static_argnames=("matmul_dtype", "k_tile"))
def encoder_block(x, params, *, matmul_dtype=None, k_tile=None):
    """x: (batch, in_dim) -> (batch, out_dim).

    Residual type is derived from the param pytree ('wr' present => projection residual),
    mirroring PyTorch's `has_residual = in_dim == out_dim`.
    matmul_dtype: optional (e.g. "bfloat16") cast of x and the matmul weights for full MXU rate;
                  LayerNorm / ReLU / residual math stays in f32.
    k_tile: optional override of the K (in_dim) tile (must divide in_dim, multiple of 128).
    """
    out_dtype = x.dtype
    batch, in_dim = x.shape
    w, b = params["w"], params["b"]
    gamma, beta = params["gamma"], params["beta"]
    out_dim = w.shape[1]
    identity = "wr" not in params                 # static (pytree structure)
    wr = None if identity else params["wr"]
    br = None if identity else params["br"]
    n_w = 1 if identity else 2

    if matmul_dtype is not None:                  # NOTE: in production, cast at param-pack time.
        mdt = jnp.dtype(matmul_dtype)
        x = x.astype(mdt)
        w = w.astype(mdt)
        if wr is not None:
            wr = wr.astype(mdt)

    x_item = jnp.dtype(x.dtype).itemsize
    w_item = jnp.dtype(w.dtype).itemsize
    budget = _vmem_budget_bytes()

    # --- K (in_dim) tiling: weight resident when small, streamed (grid axis) when large.
    if k_tile is not None:
        if k_tile != in_dim and (in_dim % k_tile != 0 or k_tile % _LANES != 0):
            raise ValueError("k_tile must divide in_dim and be a multiple of 128")
        tk = int(k_tile)
    else:
        tk = _pick_tk(in_dim, out_dim, identity, w_item, budget)
    nk = in_dim // tk

    # --- batch tile: large (step-overhead amortization), but >= 2 tiles when batch permits
    #     so the "parallel" axis shards across both v7x TensorCores; shrink to fit VMEM budget.
    sub = 16 if x_item == 2 else 8
    tm = min(1024, _round_up(batch, sub))
    if batch > sub:
        tm = min(tm, _round_up(pl.cdiv(batch, 2), sub))
    while tm > sub and _est_vmem_bytes(tm, tk, in_dim, out_dim, nk, identity,
                                       x_item, w_item) > budget:
        tm = max(sub, _round_up(tm // 2, sub))
    nb = pl.cdiv(batch, tm)

    inv_n = 1.0 / out_dim
    if nk == 1:
        grid = (nb,)
        dims = ("parallel",)
        x_spec = pl.BlockSpec((tm, in_dim), lambda i: (i, 0))
        w_spec = pl.BlockSpec((in_dim, out_dim), lambda i: (0, 0),
                              pipeline_mode=pl.Buffered(1))      # resident, single-buffered
        vec_spec = lambda: pl.BlockSpec((1, out_dim), lambda i: (0, 0),
                                        pipeline_mode=pl.Buffered(1))
        out_spec = pl.BlockSpec((tm, out_dim), lambda i: (i, 0))
        scratch = ()
        if identity:
            kernel = functools.partial(_kernel_single_id, inv_n=inv_n)
            operands = (x, w, b, gamma, beta)
            in_specs = [x_spec, w_spec, vec_spec(), vec_spec(), vec_spec()]
        else:
            kernel = functools.partial(_kernel_single_proj, inv_n=inv_n)
            operands = (x, w, wr, b, br, gamma, beta)
            in_specs = [x_spec, w_spec,
                        pl.BlockSpec((in_dim, out_dim), lambda i: (0, 0),
                                     pipeline_mode=pl.Buffered(1)),
                        vec_spec(), vec_spec(), vec_spec(), vec_spec()]
    else:
        grid = (nb, nk)
        dims = ("parallel", "arbitrary")                         # reduction axis last
        xk_spec = pl.BlockSpec((tm, tk), lambda i, k: (i, k))
        xfull_spec = pl.BlockSpec((tm, in_dim), lambda i, k: (i, 0))
        w_spec = lambda: pl.BlockSpec((tk, out_dim), lambda i, k: (k, 0))   # streamed weight
        vec_spec = lambda: pl.BlockSpec((1, out_dim), lambda i, k: (0, 0),
                                        pipeline_mode=pl.Buffered(1))
        out_spec = pl.BlockSpec((tm, out_dim), lambda i, k: (i, 0))
        acc = pltpu.VMEM((tm, out_dim), jnp.float32)
        if identity:
            kernel = functools.partial(_kernel_ktiled_id, inv_n=inv_n)
            operands = (x, x, w, b, gamma, beta)                 # chunked x + resident full-row x
            in_specs = [xk_spec, xfull_spec, w_spec(), vec_spec(), vec_spec(), vec_spec()]
            scratch = (acc,)
        else:
            kernel = functools.partial(_kernel_ktiled_proj, inv_n=inv_n)
            operands = (x, w, wr, b, br, gamma, beta)
            in_specs = [xk_spec, w_spec(), w_spec(),
                        vec_spec(), vec_spec(), vec_spec(), vec_spec()]
            scratch = (acc, acc)

    est = _est_vmem_bytes(tm, tk, in_dim, out_dim, nk, identity, x_item, w_item)
    vmem_limit = int(min(budget, max(16 * 2**20, est * 5 // 4 + (2 << 20))))

    flops = 2 * batch * in_dim * out_dim * n_w + 10 * batch * out_dim
    bytes_accessed = int(
        batch * in_dim * x_item * (2 if (identity and nk > 1) else 1)     # x
        + n_w * in_dim * out_dim * w_item * (nb if nk > 1 else 1)         # weights
        + (3 if identity else 5) * out_dim * w_item                       # bias / gamma / beta
        + batch * out_dim * x_item)                                       # output

    y = pl.pallas_call(
        kernel,
        out_shape=jax.ShapeDtypeStruct((batch, out_dim), out_dtype),
        grid_spec=pltpu.PrefetchScalarGridSpec(
            num_scalar_prefetch=0,
            grid=grid,
            in_specs=in_specs,
            out_specs=out_spec,
            scratch_shapes=scratch),
        compiler_params=pltpu.CompilerParams(
            dimension_semantics=dims,
            vmem_limit_bytes=vmem_limit),
        cost_estimate=pl.CostEstimate(flops=int(flops), transcendentals=int(batch),
                                      bytes_accessed=bytes_accessed),
    )(*operands)
    return y


# ---------------------------------------------------------------------------
# Reference + demo
# ---------------------------------------------------------------------------

def _reference(x, params):
    """Pure-JAX reference (two-pass LN, matches torch semantics in eval mode)."""
    x32 = x.astype(jnp.float32)
    h = x32 @ params["w"].astype(jnp.float32) + params["b"].astype(jnp.float32)
    mean = jnp.mean(h, axis=-1, keepdims=True)
    var = jnp.mean(jnp.square(h - mean), axis=-1, keepdims=True)
    hn = (h - mean) / jnp.sqrt(var + LN_EPS)
    hn = hn * params["gamma"].astype(jnp.float32) + params["beta"].astype(jnp.float32)
    act = jnp.maximum(hn, 0.0)
    if "wr" in params:
        res = x32 @ params["wr"].astype(jnp.float32) + params["br"].astype(jnp.float32)
    else:
        res = x32
    return (act + res).astype(x.dtype)


if __name__ == "__main__":
    key = jax.random.PRNGKey(0)
    kx, kp1, kp2, kp3, kp4 = jax.random.split(key, 5)

    # Case 1: in_dim != out_dim -> projection residual, resident weight (nk == 1).
    x1 = jax.random.normal(kx, (8, 32), jnp.float32)
    p1 = init_encoder_block_params(kp1, 32, 64)
    y1 = jax.block_until_ready(encoder_block(x1, p1))
    assert y1.shape == (8, 64)
    assert jnp.allclose(y1, _reference(x1, p1), atol=1e-4, rtol=1e-4)

    # Case 2: in_dim == out_dim -> identity residual, resident weight.
    x2 = jax.random.normal(kx, (8, 32), jnp.float32)
    p2 = init_encoder_block_params(kp2, 32, 32)
    y2 = jax.block_until_ready(encoder_block(x2, p2))
    assert y2.shape == (8, 32)
    assert jnp.allclose(y2, _reference(x2, p2), atol=1e-4, rtol=1e-4)

    # Case 3: forced K-tiling (streamed weight, f32 accumulators) -> projection residual.
    x3 = jax.random.normal(kx, (16, 256), jnp.float32)
    p3 = init_encoder_block_params(kp3, 256, 128)
    y3 = jax.block_until_ready(encoder_block(x3, p3, k_tile=128))
    assert y3.shape == (16, 128)
    assert jnp.allclose(y3, _reference(x3, p3), atol=1e-3, rtol=1e-3)

    # Case 4: forced K-tiling -> identity residual (full-row x resident for the residual add).
    x4 = jax.random.normal(kx, (16, 256), jnp.float32)
    p4 = init_encoder_block_params(kp4, 256, 256)
    y4 = jax.block_until_ready(encoder_block(x4, p4, k_tile=128))
    assert y4.shape == (16, 256)
    assert jnp.allclose(y4, _reference(x4, p4), atol=1e-3, rtol=1e-3)

    # Case 5: optional bf16 MXU inputs (LN/residual stay f32); compare against bf16-rounded ref.
    y5 = jax.block_until_ready(encoder_block(x1, p1, matmul_dtype="bfloat16"))
    p1_bf = {k: (v.astype(jnp.bfloat16).astype(jnp.float32) if k in ("w", "wr") else v)
             for k, v in p1.items()}
    ref5 = _reference(x1.astype(jnp.bfloat16).astype(jnp.float32), p1_bf)
    assert jnp.allclose(y5, ref5, atol=5e-2, rtol=5e-2)

    print("KERNEL_OK")
</pallas_src>

<mosaic_0001>
module attributes {stable_mosaic.version = 11 : i64} {
  func.func @_kernel_single_proj(%arg0: i32, %arg1: memref<8x32xf32, #tpu.memory_space<vmem>>, %arg2: memref<32x64xf32, #tpu.memory_space<vmem>>, %arg3: memref<32x64xf32, #tpu.memory_space<vmem>>, %arg4: memref<1x64xf32, #tpu.memory_space<vmem>>, %arg5: memref<1x64xf32, #tpu.memory_space<vmem>>, %arg6: memref<1x64xf32, #tpu.memory_space<vmem>>, %arg7: memref<1x64xf32, #tpu.memory_space<vmem>>, %arg8: memref<8x64xf32, #tpu.memory_space<vmem>>) attributes {dimension_semantics = [#tpu.dimension_semantics<parallel>], iteration_bounds = array<i64: 1>, scalar_prefetch = 0 : i64, scratch_operands = 0 : i64, tpu.core_type = #tpu.core_type<tc>, window_params = [{transform_indices = @transform_0, window_bounds = array<i64: 8, 32>}, {pipeline_mode = #tpu.pipeline_mode<synchronous>, transform_indices = @transform_1, window_bounds = array<i64: 32, 64>}, {pipeline_mode = #tpu.pipeline_mode<synchronous>, transform_indices = @transform_2, window_bounds = array<i64: 32, 64>}, {pipeline_mode = #tpu.pipeline_mode<synchronous>, transform_indices = @transform_3, window_bounds = array<i64: 1, 64>}, {pipeline_mode = #tpu.pipeline_mode<synchronous>, transform_indices = @transform_4, window_bounds = array<i64: 1, 64>}, {pipeline_mode = #tpu.pipeline_mode<synchronous>, transform_indices = @transform_5, window_bounds = array<i64: 1, 64>}, {pipeline_mode = #tpu.pipeline_mode<synchronous>, transform_indices = @transform_6, window_bounds = array<i64: 1, 64>}, {transform_indices = @transform_7, window_bounds = array<i64: 8, 64>}]} {
    %c0 = arith.constant 0 : index
    %c0_0 = arith.constant 0 : index
    %0 = vector.load %arg1[%c0, %c0_0] : memref<8x32xf32, #tpu.memory_space<vmem>>, vector<8x32xf32>
    %c0_1 = arith.constant 0 : index
    %c0_2 = arith.constant 0 : index
    %1 = vector.load %arg2[%c0_1, %c0_2] : memref<32x64xf32, #tpu.memory_space<vmem>>, vector<32x64xf32>
    %cst = arith.constant dense<0.000000e+00> : vector<8x64xf32>
    %2 = tpu.matmul %0, %1, %cst {dimension_numbers = #tpu.dot_dimension_numbers<[1], [0], [0], [1], [0, 0, 1, 1], [], []>} : vector<8x32xf32>, vector<32x64xf32>, vector<8x64xf32> -> vector<8x64xf32>
    %c0_3 = arith.constant 0 : index
    %c0_4 = arith.constant 0 : index
    %3 = vector.load %arg3[%c0_3, %c0_4] : memref<32x64xf32, #tpu.memory_space<vmem>>, vector<32x64xf32>
    %cst_5 = arith.constant dense<0.000000e+00> : vector<8x64xf32>
    %4 = tpu.matmul %0, %3, %cst_5 {dimension_numbers = #tpu.dot_dimension_numbers<[1], [0], [0], [1], [0, 0, 1, 1], [], []>} : vector<8x32xf32>, vector<32x64xf32>, vector<8x64xf32> -> vector<8x64xf32>
    %c0_6 = arith.constant 0 : index
    %c0_7 = arith.constant 0 : index
    %5 = vector.load %arg4[%c0_6, %c0_7] : memref<1x64xf32, #tpu.memory_space<vmem>>, vector<1x64xf32>
    %6 = vector.broadcast %5 : vector<1x64xf32> to vector<8x64xf32>
    %7 = arith.addf %2, %6 : vector<8x64xf32>
    %c0_8 = arith.constant 0 : index
    %c0_9 = arith.constant 0 : index
    %8 = vector.load %arg6[%c0_8, %c0_9] : memref<1x64xf32, #tpu.memory_space<vmem>>, vector<1x64xf32>
    %c0_10 = arith.constant 0 : index
    %c0_11 = arith.constant 0 : index
    %9 = vector.load %arg7[%c0_10, %c0_11] : memref<1x64xf32, #tpu.memory_space<vmem>>, vector<1x64xf32>
    %cst_12 = arith.constant dense<0.000000e+00> : vector<8xf32>
    %10 = vector.multi_reduction <add>, %7, %cst_12 [1] : vector<8x64xf32> to vector<8xf32>
    %11 = vector.shape_cast %10 : vector<8xf32> to vector<8x1xf32>
    %cst_13 = arith.constant 1.562500e-02 : f32
    %12 = vector.broadcast %cst_13 : f32 to vector<8x1xf32>
    %13 = arith.mulf %11, %12 : vector<8x1xf32>
    %14 = vector.broadcast %13 : vector<8x1xf32> to vector<8x64xf32>
    %15 = arith.subf %7, %14 : vector<8x64xf32>
    %16 = arith.mulf %15, %15 : vector<8x64xf32>
    %cst_14 = arith.constant dense<0.000000e+00> : vector<8xf32>
    %17 = vector.multi_reduction <add>, %16, %cst_14 [1] : vector<8x64xf32> to vector<8xf32>
    %18 = vector.shape_cast %17 : vector<8xf32> to vector<8x1xf32>
    %cst_15 = arith.constant 1.562500e-02 : f32
    %19 = vector.broadcast %cst_15 : f32 to vector<8x1xf32>
    %20 = arith.mulf %18, %19 : vector<8x1xf32>
    %cst_16 = arith.constant 9.99999974E-6 : f32
    %21 = vector.broadcast %cst_16 : f32 to vector<8x1xf32>
    %22 = arith.addf %20, %21 : vector<8x1xf32>
    %23 = math.rsqrt %22 : vector<8x1xf32>
    %24 = vector.broadcast %23 : vector<8x1xf32> to vector<8x64xf32>
    %25 = arith.mulf %15, %24 : vector<8x64xf32>
    %26 = vector.broadcast %8 : vector<1x64xf32> to vector<8x64xf32>
    %27 = arith.mulf %25, %26 : vector<8x64xf32>
    %28 = vector.broadcast %9 : vector<1x64xf32> to vector<8x64xf32>
    %29 = arith.addf %27, %28 : vector<8x64xf32>
    %cst_17 = arith.constant 0.000000e+00 : f32
    %30 = vector.broadcast %cst_17 : f32 to vector<8x64xf32>
    %31 = arith.maximumf %29, %30 : vector<8x64xf32>
    %32 = arith.addf %31, %4 : vector<8x64xf32>
    %c0_18 = arith.constant 0 : index
    %c0_19 = arith.constant 0 : index
    %33 = vector.load %arg5[%c0_18, %c0_19] : memref<1x64xf32, #tpu.memory_space<vmem>>, vector<1x64xf32>
    %34 = vector.broadcast %33 : vector<1x64xf32> to vector<8x64xf32>
    %35 = arith.addf %32, %34 : vector<8x64xf32>
    %c0_20 = arith.constant 0 : index
    %c0_21 = arith.constant 0 : index
    %36 = vector.load %arg8[%c0_20, %c0_21] : memref<8x64xf32, #tpu.memory_space<vmem>>, vector<8x64xf32>
    tpu.vector_store %arg8[%c0_20, %c0_21], %35 {strides = array<i32>} : memref<8x64xf32, #tpu.memory_space<vmem>>, vector<8x64xf32>,
    return
  }
  func.func @transform_0(%arg0: i32) -> (i32, i32) {
    %c0_i32 = arith.constant 0 : i32
    %c0_i32_0 = arith.constant 0 : i32
    return %arg0, %c0_i32 : i32, i32
  }
  func.func @transform_1(%arg0: i32) -> (i32, i32) {
    %c0_i32 = arith.constant 0 : i32
    %c0_i32_0 = arith.constant 0 : i32
    %c0_i32_1 = arith.constant 0 : i32
    return %c0_i32, %c0_i32_0 : i32, i32
  }
  func.func @transform_2(%arg0: i32) -> (i32, i32) {
    %c0_i32 = arith.constant 0 : i32
    %c0_i32_0 = arith.constant 0 : i32
    %c0_i32_1 = arith.constant 0 : i32
    return %c0_i32, %c0_i32_0 : i32, i32
  }
  func.func @transform_3(%arg0: i32) -> (i32, i32) {
    %c0_i32 = arith.constant 0 : i32
    %c0_i32_0 = arith.constant 0 : i32
    %c0_i32_1 = arith.constant 0 : i32
    return %c0_i32, %c0_i32_0 : i32, i32
  }
  func.func @transform_4(%arg0: i32) -> (i32, i32) {
    %c0_i32 = arith.constant 0 : i32
    %c0_i32_0 = arith.constant 0 : i32
    %c0_i32_1 = arith.constant 0 : i32
    return %c0_i32, %c0_i32_0 : i32, i32
  }
  func.func @transform_5(%arg0: i32) -> (i32, i32) {
    %c0_i32 = arith.constant 0 : i32
    %c0_i32_0 = arith.constant 0 : i32
    %c0_i32_1 = arith.constant 0 : i32
    return %c0_i32, %c0_i32_0 : i32, i32
  }
  func.func @transform_6(%arg0: i32) -> (i32, i32) {
    %c0_i32 = arith.constant 0 : i32
    %c0_i32_0 = arith.constant 0 : i32
    %c0_i32_1 = arith.constant 0 : i32
    return %c0_i32, %c0_i32_0 : i32, i32
  }
  func.func @transform_7(%arg0: i32) -> (i32, i32) {
    %c0_i32 = arith.constant 0 : i32
    %c0_i32_0 = arith.constant 0 : i32
    return %arg0, %c0_i32 : i32, i32
  }
}

</mosaic_0001>

<bundles_post_ra>
// kernel: encoder_block.1
= control target key start
LH: loop header
LB: loop body
LE: loop exit
PB: predicated region body
PF: predicated region fallthrough
CT: control target
= control target key end

     0   :  { %12 = vsyncpa [#allocation3], 0  ;;  %s529_s0 = inlined_call_operand.hbm [shape: f32[8,32], index: 0, kind: input, shape index: {}]   ;;  %s530_s1 = inlined_call_operand.hbm [shape: f32[32,64], index: 1, kind: input, shape index: {}]   ;;  %s531_s2 = inlined_call_operand.hbm [shape: f32[32,64], index: 2, kind: input, shape index: {}]   ;;  %s532_s3 = inlined_call_operand.vmem [shape: f32[1,64], index: 3, kind: input, shape index: {}]   ;;  %s533_s4 = inlined_call_operand.vmem [shape: f32[1,64], index: 4, kind: input, shape index: {}]   ;;  %s534_s5 = inlined_call_operand.vmem [shape: f32[1,64], index: 5, kind: input, shape index: {}]   ;;  %s535_s6 = inlined_call_operand.hbm [shape: f32[1,64], index: 6, kind: input, shape index: {}]   ;;  %s536_s7 = inlined_call_operand.hbm [shape: f32[8,64], index: 7, kind: output, shape index: {}]  }
   0x1   :  { %13 = vsyncpa [#allocation6], 0 }
   0x2   :  { %14 = vsyncpa [#allocation9], 0 }
   0x3   :  { %15 = vsyncpa [#allocation4], 0  ;;  %s453_s24 = smov [#allocation5]  }
   0x4   :  { %s31_s25 = sshll.u32 %s453_s24, 4  ;;  %s32_s25 = int_to_ptr.vmem [resolvable:$true] %s31_s25 }
   0x5   :  { %s353_s26 = scalar_lea.vmem %s32_s25, 512  ;;  %p358_p1 = scmp.lt.s32.totalorder %s32_s25, %s32_s25 }
   0x6   :  { %p354_p0 = scmp.ne.s32.totalorder %s32_s25, %s353_s26  ;;  %p359_p2 = scmp.lt.s32.totalorder %s353_s26, %s353_s26 }
   0x8   :  { %p360_p3 = por %p359_p2, %p358_p1 }
   0xa   :  { %p361_p4 = pnand %p360_p3, %p354_p0 }
   0xc   :  { %364 = shalt.err (!%p361_p4)
}
   0xd   :  { %s454_s27 = smov 128   ;;  %s455_s28 = smov 8  }
   0xe   :  { %37 = dma.hbm_to_vmem [thread:$0]  %s530_s1, 512, %s32_s25, [#allocation6], %s454_s27, %s454_s27, %s455_s28  }
   0xf   :  { %s456_s8 = smov [#allocation2]   ;;  %s457_s10 = smov [#allocation7]  }
  0x10   :  { %s22_s9 = sshll.u32 %s456_s8, 4  ;;  %s43_s11 = sshll.u32 %s457_s10, 4  ;;  %s23_s9 = int_to_ptr.vmem [resolvable:$true] %s22_s9  ;;  %s44_s11 = int_to_ptr.vmem [resolvable:$true] %s43_s11 }
  0x11   :  { %s373_s12 = scalar_lea.vmem %s23_s9, 128  ;;  %p378_p6 = scmp.lt.s32.totalorder %s23_s9, %s23_s9 }
  0x12   :  { %p374_p5 = scmp.ne.s32.totalorder %s23_s9, %s373_s12  ;;  %p379_p7 = scmp.lt.s32.totalorder %s373_s12, %s373_s12 }
  0x14   :  { %p380_p8 = por %p379_p7, %p378_p6 }
  0x16   :  { %p381_p9 = pnand %p380_p8, %p374_p5 }
  0x18   :  { %384 = shalt.err (!%p381_p9)
}
  0x19   :  { %25 = dma.hbm_to_vmem [thread:$0]  %s529_s0, 128, %s23_s9, [#allocation3]  }
  0x1a   :  { %s393_s15 = scalar_lea.vmem %s44_s11, 512  ;;  %p398_p11 = scmp.lt.s32.totalorder %s44_s11, %s44_s11 }
  0x1b   :  { %p394_p10 = scmp.ne.s32.totalorder %s44_s11, %s393_s15  ;;  %p399_p12 = scmp.lt.s32.totalorder %s393_s15, %s393_s15 }
  0x1d   :  { %p400_p13 = por %p399_p12, %p398_p11 }
  0x1f   :  { %p401_p0 = pnand %p400_p13, %p394_p10 }
  0x21   :  { %404 = shalt.err (!%p401_p0)
}
  0x22   :  { %49 = dma.hbm_to_vmem [thread:$0]  %s531_s2, 512, %s44_s11, [#allocation6], %s454_s27, %s454_s27, %s455_s28  }
  0x23   :  { %s458_s17 = smov [#allocation8]  }
  0x24   :  { %s62_s18 = sshll.u32 %s458_s17, 4  ;;  %s63_s18 = int_to_ptr.vmem [resolvable:$true] %s62_s18 }
  0x25   :  { %s413_s19 = scalar_lea.vmem %s63_s18, 16  ;;  %s417_s20 = scalar_lea.vmem %s63_s18, 32 }
  0x26   :  { %p414_p1 = scmp.ne.s32.totalorder %s63_s18, %s413_s19  ;;  %p418_p2 = scmp.lt.s32.totalorder %s63_s18, %s63_s18 }
  0x27   :  { %p419_p3 = scmp.lt.s32.totalorder %s417_s20, %s413_s19 }
  0x29   :  { %p420_p4 = por %p419_p3, %p418_p2 }
  0x2b   :  { %p421_p5 = pnand %p420_p4, %p414_p1 }
  0x2d   :  { %424 = shalt.err (!%p421_p5)
}
  0x2e   :  { %65 = dma.hbm_to_vmem [thread:$0]  %s535_s6, 16, %s63_s18, [#allocation9]  }
  0x2f   :  { %445 = dma.done.wait [#allocation3], 128  }
  0x30   :  { %446 = vsyncadd [#allocation3], 4294967168 }
  0x31   :  { %447 = dma.done.wait [#allocation6], 1024  }
  0x32   :  { %448 = vsyncadd [#allocation6], 4294966272 }
  0x33   :  { %449 = dma.done.wait [#allocation9], 16  }
  0x34   :  { %450 = vsyncadd [#allocation9], 4294967280  ;;  %v459_v0 = vmov 0.0   ;;  %vm460_vm0 = vmmov 0   ;;  %v82_v1 = vld [vmem:[#allocation5 + $0x18] sm:$0xff]  ;;  %v81_v2 = vld [vmem:[#allocation5 + $0x10] sm:$0xff] }
  0x35   :  { %323 = vmatprep.subr.mxu1 %v459_v0  ;;  %331 = vmatprep.mubr.msk.f32.mxu1 %vm460_vm0, %v459_v0  ;;  %v80_v3 = vld [vmem:[#allocation5 + $0x8] sm:$0xff]  ;;  %v79_v4 = vld [vmem:[#allocation5] sm:$0xff]  ;;  %v78_v5 = vld [vmem:[#allocation2] sm:$0xff]  ;;  %vm87_vm1 = vcmask 261120   ;;  %vm240_vm2 = vcmask 523264   ;;  %s461_s25 = smov [#allocation10]  }
  0x36   :  { %312 = vmatprep.subr.mxu0 %v459_v0  ;;  %320 = vmatprep.mubr.msk.f32.mxu0 %vm460_vm0, %v459_v0  ;;  %v86_v6 = vld [vmem:[#allocation7 + $0x18] sm:$0xff]  ;;  %v85_v7 = vld [vmem:[#allocation7 + $0x10] sm:$0xff]  ;;  %v84_v8 = vld [vmem:[#allocation7 + $0x8] sm:$0xff]  ;;  %s285_s26 = sshll.u32 %s461_s25, 4  ;;  %s286_s26 = int_to_ptr.vmem [resolvable:$true] %s285_s26 }
  0x37   :  { %324 = vmatpush3.msra.mxu1 %v82_v1  ;;  %313 = vmatpush3.msra.mxu0 %v86_v6  ;;  %v83_v9 = vld [vmem:[#allocation7] sm:$0xff]  ;;  %v297_v10 = vld [vmem:[%s532_s3] ss:$0 sm:$0xff]  ;;  %s425_s27 = scalar_lea.vmem %s286_s26, 128  ;;  %p430_p7 = scmp.lt.s32.totalorder %s286_s26, %s286_s26 }
  0x38   :  { %325 = vmatprep.subr.mxu1 %v459_v0  ;;  %314 = vmatprep.subr.mxu0 %v459_v0  ;;  %v299_v26 = vld [vmem:[%s534_s5] ss:$0 sm:$0xff]  ;;  %v300_v28 = vld [vmem:[#allocation8] ss:$0 sm:$0xff]  ;;  %p426_p6 = scmp.ne.s32.totalorder %s286_s26, %s425_s27  ;;  %p431_p8 = scmp.lt.s32.totalorder %s425_s27, %s425_s27 }
  0x39   :  { %326 = vmatpush3.msra.mxu1 %v81_v2  ;;  %315 = vmatpush3.msra.mxu0 %v85_v7  ;;  %v301_v32 = vld [vmem:[%s533_s4] ss:$0 sm:$0xff] }
  0x3a   :  { %327 = vmatprep.subr.mxu1 %v459_v0  ;;  %316 = vmatprep.subr.mxu0 %v459_v0  ;;  %p432_p9 = por %p431_p8, %p430_p7 }
  0x3b   :  { %328 = vmatpush3.msra.mxu1 %v80_v3  ;;  %317 = vmatpush3.msra.mxu0 %v84_v8 }
  0x3c   :  { %329 = vmatprep.subr.mxu1 %v459_v0  ;;  %318 = vmatprep.subr.mxu0 %v459_v0  ;;  %p433_p10 = pnand %p432_p9, %p426_p6 }
  0x3d   :  { %330 = vmatpush3.msra.mxu1 %v79_v4  ;;  %319 = vmatpush3.msra.mxu0 %v83_v9 }
  0x3e   :  { %332 = vmatmul.mubr.msk.f32.vlgmr.msra.gmra.mxu1 %vm87_vm1, %v78_v5  ;;  %321 = vmatmul.mubr.msk.f32.vlgmr.msra.gmra.mxu0 %vm87_vm1, %v78_v5 }
  0xfe   :  { %v234_v11 = vpop.f32.mrf.mxu1  ;;  %v157_v20 = vpop.f32.mrf.mxu0 }
  0xff   :  { %v235_v12 = vadd.f32 %v297_v10, %v234_v11 }
 0x100   :  { %v333_v13 = vpop.f32.mrf.mxu1  ;;  %v322_v21 = vpop.f32.mrf.mxu0 }
 0x101   :  { %v241_v14 = vsel %vm240_vm2, %v235_v12, 0.0 }
 0x102   :  { %242 = vadd.xlane.f32.xlu0 %v241_v14 }
 0x18b   :  { %v243_v15 = vpop.xlane.xlu0 %242 }
 0x18c   :  { %v244_v16 = vmul.f32 0.015625, %v243_v15 }
 0x18e   :  { %v245_v17 = vsub.f32 %v235_v12, %v244_v16 }
 0x190   :  { %v246_v18 = vmul.f32 %v245_v17, %v245_v17 }
 0x192   :  { %v247_v19 = vsel %vm240_vm2, %v246_v18, 0.0 }
 0x193   :  { %248 = vadd.xlane.f32.xlu0 %v247_v19 }
 0x21c   :  { %v249_v22 = vpop.xlane.xlu0 %248 }
 0x21d   :  { %v250_v23 = vmul.f32 0.015625, %v249_v22 }
 0x21f   :  { %v251_v24 = vadd.f32 1e-05, %v250_v23 }
 0x221   :  { %343 = vrsqrt.f32 %v251_v24 }
 0x22e   :  { %v344_v25 = vpop.eup %343 }
 0x22f   :  { %v253_v27 = vmul.f32 %v344_v25, %v245_v17 }
 0x231   :  { %v260_v29 = vmul.f32 %v299_v26, %v253_v27 }
 0x233   :  { %v267_v30 = vadd.f32 %v300_v28, %v260_v29 }
 0x235   :  { %v268_v31 = vmax.f32 %v267_v30, 0.0 }
 0x237   :  { %v269_v33 = vadd.f32 %v268_v31, %v157_v20 }
 0x239   :  { %v277_v34 = vadd.f32 %v301_v32, %v269_v33 }
 0x23b   :  { %278 = vst.msk [vmem:[#allocation10] sm:$0xff] %vm240_vm2, %v277_v34 }
 0x23c   :  { %436 = shalt.err (!%p433_p10)
}
 0x23d   :  { %288 = dma.vmem_to_hbm [thread:$0]  %s286_s26, 128, %s536_s7, [#allocation4]  }
 0x23e   :  { %451 = dma.done.wait [#allocation4], 128  }
 0x23f   :  { %452 = vsyncadd [#allocation4], 4294967168 }
 0x240   :  { %292 = vsyncpa [#allocation3], 1 }
 0x241   :  { %293 = vsyncpa [#allocation6], 1 }
 0x242   :  { %294 = vsyncpa [#allocation9], 1 }
 0x243   :  { %295 = vsyncpa [#allocation4], 1 }

</bundles_post_ra>
